<compile_context>
chip_gen: v5e
topology: v5e:2x2
jax: 0.10.0
libtpu: 0.0.40
codegen_flags: <defaults>
</compile_context>

<pallas_src>
import functools

import jax
import jax.numpy as jnp
from jax.experimental import pallas as pl
from jax.experimental.pallas import tpu as pltpu


# ----------------------------------------------------------------------------
# helpers
# ----------------------------------------------------------------------------
_WORKING_SET_BUDGET = 34 << 20   # per-kernel VMEM working-set target (bytes)
_BRES_MAX_B_BYTES = 8 << 20      # keep the B panel fully VMEM-resident up to this


def _round_up(x, m):
    return ((x + m - 1) // m) * m


def _pick_tile(dim, candidates):
    """Largest candidate tile that evenly divides `dim` (dim is a multiple of 128)."""
    for c in candidates:
        if dim % c == 0:
            return c
    return dim


def _pad2d(a, rows, cols):
    r, c = a.shape
    if r == rows and c == cols:
        return a
    return jnp.pad(a, ((0, rows - r), (0, cols - c)))


def _vmem_limit(working_set_bytes):
    # explicit scoped-VMEM limit: enough headroom for double-buffering, but
    # comfortably inside v7x's 64 MiB physical VMEM.
    return int(min(48 << 20, max(working_set_bytes + (4 << 20), 16 << 20)))


# ----------------------------------------------------------------------------
# Kernel A (main path): O = [relu](A @ B), B fully VMEM-resident.
#   grid = (M/tm, K/tk); A tile (tm,tk) streamed; B (K,N) DMA'd once.
# ----------------------------------------------------------------------------
def _mm_bres_kernel(a_ref, b_ref, o_ref, acc_ref, *, relu, tk):
    kk = pl.program_id(1)

    @pl.when(kk == 0)
    def _init():
        acc_ref[...] = jnp.zeros_like(acc_ref)

    koff = pl.multiple_of(kk * tk, tk)
    acc_ref[...] += jnp.dot(
        a_ref[...], b_ref[pl.ds(koff, tk), :], preferred_element_type=jnp.float32
    )

    @pl.when(kk == pl.num_programs(1) - 1)
    def _finish():
        h = acc_ref[...]
        if relu:
            h = jnp.maximum(h, 0.0)
        o_ref[...] = h.astype(o_ref.dtype)


def _matmul_relu_b_resident(a, b, *, relu, out_dtype):
    m, k = a.shape
    _, n = b.shape
    a_bytes = a.dtype.itemsize
    b_bytes = b.dtype.itemsize
    o_bytes = jnp.dtype(out_dtype).itemsize

    def working_set(tm, tk):
        return (2 * tm * tk * a_bytes          # A double-buffered
                + 2 * k * n * b_bytes          # B panel (conservative x2)
                + 2 * tm * n * o_bytes         # out double-buffered
                + tm * n * 4)                  # f32 accumulator scratch

    tm = _pick_tile(m, (1024, 512, 256, 128))
    tk = _pick_tile(k, (2048, 1024, 512, 256, 128))
    while working_set(tm, tk) > _WORKING_SET_BUDGET and (tm > 128 or tk > 128):
        if tk >= tm and tk > 128:
            tk //= 2
        else:
            tm //= 2

    grid = (m // tm, k // tk)
    kernel = functools.partial(_mm_bres_kernel, relu=relu, tk=tk)
    return pl.pallas_call(
        kernel,
        out_shape=jax.ShapeDtypeStruct((m, n), out_dtype),
        grid_spec=pltpu.PrefetchScalarGridSpec(
            num_scalar_prefetch=0,
            grid=grid,
            in_specs=[
                pl.BlockSpec((tm, tk), lambda i, kk: (i, kk)),
                # constant block index -> DMA'd once, resident across all row tiles
                pl.BlockSpec((k, n), lambda i, kk: (0, 0)),
            ],
            out_specs=pl.BlockSpec((tm, n), lambda i, kk: (i, 0)),
            scratch_shapes=[pltpu.VMEM((tm, n), jnp.float32)],
        ),
        compiler_params=pltpu.CompilerParams(
            dimension_semantics=("parallel", "arbitrary"),
            vmem_limit_bytes=_vmem_limit(working_set(tm, tk)),
        ),
    )(a, b)


# ----------------------------------------------------------------------------
# Kernel B (fallback): generic tiled O = [relu](A @ B), 3-D grid, f32 acc.
# ----------------------------------------------------------------------------
def _mm_tiled_kernel(a_ref, b_ref, o_ref, acc_ref, *, relu):
    @pl.when(pl.program_id(2) == 0)
    def _init():
        acc_ref[...] = jnp.zeros_like(acc_ref)

    acc_ref[...] += jnp.dot(
        a_ref[...], b_ref[...], preferred_element_type=jnp.float32
    )

    @pl.when(pl.program_id(2) == pl.num_programs(2) - 1)
    def _finish():
        h = acc_ref[...]
        if relu:
            h = jnp.maximum(h, 0.0)
        o_ref[...] = h.astype(o_ref.dtype)


def _matmul_relu_tiled(a, b, *, relu, out_dtype):
    m, k = a.shape
    _, n = b.shape
    a_bytes = a.dtype.itemsize
    b_bytes = b.dtype.itemsize
    o_bytes = jnp.dtype(out_dtype).itemsize

    def working_set(tm, tn, tk):
        return (2 * tm * tk * a_bytes + 2 * tk * tn * b_bytes
                + 2 * tm * tn * o_bytes + tm * tn * 4)

    tm = _pick_tile(m, (512, 256, 128))
    tn = _pick_tile(n, (256, 128))
    tk = _pick_tile(k, (2048, 1024, 512, 256, 128))
    while working_set(tm, tn, tk) > _WORKING_SET_BUDGET and (tm > 128 or tk > 128):
        if tk >= tm and tk > 128:
            tk //= 2
        else:
            tm //= 2

    grid = (m // tm, n // tn, k // tk)
    kernel = functools.partial(_mm_tiled_kernel, relu=relu)
    return pl.pallas_call(
        kernel,
        out_shape=jax.ShapeDtypeStruct((m, n), out_dtype),
        grid_spec=pltpu.PrefetchScalarGridSpec(
            num_scalar_prefetch=0,
            grid=grid,
            in_specs=[
                pl.BlockSpec((tm, tk), lambda i, j, kk: (i, kk)),
                pl.BlockSpec((tk, tn), lambda i, j, kk: (kk, j)),
            ],
            out_specs=pl.BlockSpec((tm, tn), lambda i, j, kk: (i, j)),
            scratch_shapes=[pltpu.VMEM((tm, tn), jnp.float32)],
        ),
        compiler_params=pltpu.CompilerParams(
            dimension_semantics=("parallel", "parallel", "arbitrary"),
            vmem_limit_bytes=_vmem_limit(working_set(tm, tn, tk)),
        ),
    )(a, b)


def matmul_relu(a, b, *, relu, out_dtype):
    """O = [relu](A @ B); all dims multiples of 128; f32 accumulation."""
    m, k = a.shape
    k2, n = b.shape
    assert k == k2 and a.dtype == b.dtype
    assert m % 128 == 0 and n % 128 == 0 and k % 128 == 0
    if k * n * b.dtype.itemsize <= _BRES_MAX_B_BYTES and n <= 512:
        return _matmul_relu_b_resident(a, b, relu=relu, out_dtype=out_dtype)
    return _matmul_relu_tiled(a, b, relu=relu, out_dtype=out_dtype)


# ----------------------------------------------------------------------------
# One-time setup: pad to multiples of 128 and cast (done OUTSIDE the forward).
# ----------------------------------------------------------------------------
def prepare_gcn(adj, weights, *, compute_dtype=jnp.bfloat16):
    n = adj.shape[0]
    n_pad = _round_up(n, 128)
    adj_p = _pad2d(adj, n_pad, n_pad).astype(compute_dtype)
    weights_p = []
    for w in weights:
        f_in, f_out = w.shape
        weights_p.append(
            _pad2d(w, _round_up(f_in, 128), _round_up(f_out, 128)).astype(compute_dtype)
        )
    return adj_p, weights_p


def prepare_inputs(x, *, compute_dtype=jnp.bfloat16):
    n, f = x.shape
    return _pad2d(x, _round_up(n, 128), _round_up(f, 128)).astype(compute_dtype)


# ----------------------------------------------------------------------------
# Model.forward equivalent on pre-padded operands:
#   each layer: h = act(adj @ (h @ W)); ReLU between layers, identity at end.
# ----------------------------------------------------------------------------
def gcn_forward_padded(x_p, adj_p, weights_p):
    h = x_p
    num_layers = len(weights_p)
    for idx, w_p in enumerate(weights_p):
        relu = idx < num_layers - 1
        layer_out_dtype = h.dtype if relu else jnp.float32
        # Cheaper association per layer: the N^2 matmul runs over the smaller
        # of f_in / f_out; ReLU fuses into whichever matmul is last.
        if w_p.shape[1] <= w_p.shape[0]:
            xw = matmul_relu(h, w_p, relu=False, out_dtype=h.dtype)
            h = matmul_relu(adj_p, xw, relu=relu, out_dtype=layer_out_dtype)
        else:
            ax = matmul_relu(adj_p, h, relu=False, out_dtype=h.dtype)
            h = matmul_relu(ax, w_p, relu=relu, out_dtype=layer_out_dtype)
    return h


def model_forward(inputs, adj, weights, *, compute_dtype=jnp.bfloat16):
    """Convenience wrapper (pads per-call). Hoist prepare_* in production."""
    adj_p, weights_p = prepare_gcn(adj, weights, compute_dtype=compute_dtype)
    x_p = prepare_inputs(inputs, compute_dtype=compute_dtype)
    out_p = gcn_forward_padded(x_p, adj_p, weights_p)
    return out_p[: inputs.shape[0], : weights[-1].shape[1]]


# Pure-JAX reference (same math) for a sanity check.
def model_forward_ref(inputs, adj, weights):
    h = inputs
    num_layers = len(weights)
    for idx, w in enumerate(weights):
        h = adj @ (h @ w)
        if idx < num_layers - 1:
            h = jnp.maximum(h, 0.0)
    return h


def _glorot(key, shape):
    limit = jnp.sqrt(6.0 / (shape[0] + shape[1]))
    return jax.random.uniform(key, shape, jnp.float32, -limit, limit)


def _make_problem(key, n, f, h_dim, c):
    k_x, k_a, k_w0, k_w1 = jax.random.split(key, 4)
    x = jax.random.normal(k_x, (n, f), jnp.float32)
    # Symmetric normalized adjacency  D^-1/2 (A + I) D^-1/2.
    a_rand = jax.random.uniform(k_a, (n, n), jnp.float32)
    a_bin = (a_rand > 0.8).astype(jnp.float32)
    a_sym = jnp.maximum(a_bin, a_bin.T) + jnp.eye(n, dtype=jnp.float32)
    deg = jnp.sum(a_sym, axis=1)
    d_inv_sqrt = 1.0 / jnp.sqrt(deg)
    adj = a_sym * d_inv_sqrt[:, None] * d_inv_sqrt[None, :]
    weights = [_glorot(k_w0, (f, h_dim)), _glorot(k_w1, (h_dim, c))]
    return x, adj, weights


if __name__ == "__main__":
    key = jax.random.PRNGKey(0)
    k1, k2 = jax.random.split(key)

    fwd = jax.jit(gcn_forward_padded)

    # Case 1: small canonical 2-layer GCN (single tile after padding).
    x, adj, weights = _make_problem(k1, n=32, f=16, h_dim=32, c=8)
    ref = model_forward_ref(x, adj, weights)

    # f32 operands: tight tolerance.
    adj_p, ws_p = prepare_gcn(adj, weights, compute_dtype=jnp.float32)
    x_p = prepare_inputs(x, compute_dtype=jnp.float32)
    out = jax.block_until_ready(fwd(x_p, adj_p, ws_p))[:32, :8]
    assert out.shape == (32, 8)
    assert jnp.allclose(out, ref, atol=1e-4, rtol=1e-4)

    # bf16 MXU operands (default, all generations), f32 accumulation.
    adj_b, ws_b = prepare_gcn(adj, weights)          # bf16 default
    x_b = prepare_inputs(x)
    out_b = jax.block_until_ready(fwd(x_b, adj_b, ws_b))[:32, :8]
    assert jnp.allclose(out_b, ref, atol=5e-2, rtol=5e-2)

    # Case 2: ragged (non-multiple-of-128) sizes exercising padding, multiple
    # row tiles, and a multi-step K reduction in the adjacency matmul.
    x2, adj2, weights2 = _make_problem(k2, n=384, f=70, h_dim=64, c=12)
    ref2 = model_forward_ref(x2, adj2, weights2)
    adj2_p, ws2_p = prepare_gcn(adj2, weights2, compute_dtype=jnp.float32)
    x2_p = prepare_inputs(x2, compute_dtype=jnp.float32)
    out2 = jax.block_until_ready(fwd(x2_p, adj2_p, ws2_p))[:384, :12]
    assert out2.shape == (384, 12)
    assert jnp.allclose(out2, ref2, atol=1e-4, rtol=1e-4)

    # bf16 path on the ragged case too.
    adj2_b, ws2_b = prepare_gcn(adj2, weights2)
    x2_b = prepare_inputs(x2)
    out2_b = jax.block_until_ready(fwd(x2_b, adj2_b, ws2_b))[:384, :12]
    assert jnp.allclose(out2_b, ref2, atol=5e-2, rtol=5e-2)

    print("KERNEL_OK")
</pallas_src>

<mosaic_0001>
module attributes {stable_mosaic.version = 11 : i64} {
  func.func @_mm_bres_kernel(%arg0: i32, %arg1: i32, %arg2: memref<128x128xf32, #tpu.memory_space<vmem>>, %arg3: memref<128x128xf32, #tpu.memory_space<vmem>>, %arg4: memref<128x128xf32, #tpu.memory_space<vmem>>, %arg5: memref<128x128xf32, #tpu.memory_space<vmem>>) attributes {dimension_semantics = [#tpu.dimension_semantics<parallel>, #tpu.dimension_semantics<arbitrary>], iteration_bounds = array<i64: 1, 1>, scalar_prefetch = 0 : i64, scratch_operands = 1 : i64, tpu.core_type = #tpu.core_type<tc>, window_params = [{transform_indices = @transform_0, window_bounds = array<i64: 128, 128>}, {pipeline_mode = #tpu.pipeline_mode<synchronous>, transform_indices = @transform_1, window_bounds = array<i64: 128, 128>}, {transform_indices = @transform_2, window_bounds = array<i64: 128, 128>}]} {
    %c0_i32 = arith.constant 0 : i32
    %0 = arith.cmpi eq, %arg1, %c0_i32 : i32
    %1 = arith.extui %0 : i1 to i32
    %c0_i32_0 = arith.constant 0 : i32
    %2 = arith.cmpi ne, %1, %c0_i32_0 : i32
    scf.if %2 {
      %cst_9 = arith.constant 0.000000e+00 : f32
      %15 = vector.broadcast %cst_9 : f32 to vector<128x128xf32>
      %c0_10 = arith.constant 0 : index
      %c0_11 = arith.constant 0 : index
      %16 = vector.load %arg5[%c0_10, %c0_11] : memref<128x128xf32, #tpu.memory_space<vmem>>, vector<128x128xf32>
      tpu.vector_store %arg5[%c0_10, %c0_11], %15 {strides = array<i32>} : memref<128x128xf32, #tpu.memory_space<vmem>>, vector<128x128xf32>,
    } else {
    }
    %c128_i32 = arith.constant 128 : i32
    %3 = arith.muli %arg1, %c128_i32 : i32
    %4 = tpu.assume_multiple %3, 128 : i32
    %c0 = arith.constant 0 : index
    %c0_1 = arith.constant 0 : index
    %5 = vector.load %arg5[%c0, %c0_1] : memref<128x128xf32, #tpu.memory_space<vmem>>, vector<128x128xf32>
    %c0_2 = arith.constant 0 : index
    %c0_3 = arith.constant 0 : index
    %6 = vector.load %arg2[%c0_2, %c0_3] : memref<128x128xf32, #tpu.memory_space<vmem>>, vector<128x128xf32>
    %7 = arith.index_cast %4 : i32 to index
    %c0_4 = arith.constant 0 : index
    %8 = vector.load %arg3[%7, %c0_4] : memref<128x128xf32, #tpu.memory_space<vmem>>, vector<128x128xf32>
    %cst = arith.constant dense<0.000000e+00> : vector<128x128xf32>
    %9 = tpu.matmul %6, %8, %cst {dimension_numbers = #tpu.dot_dimension_numbers<[1], [0], [0], [1], [0, 0, 1, 1], [], []>} : vector<128x128xf32>, vector<128x128xf32>, vector<128x128xf32> -> vector<128x128xf32>
    %10 = arith.addf %5, %9 : vector<128x128xf32>
    %c0_5 = arith.constant 0 : index
    %c0_6 = arith.constant 0 : index
    %11 = vector.load %arg5[%c0_5, %c0_6] : memref<128x128xf32, #tpu.memory_space<vmem>>, vector<128x128xf32>
    tpu.vector_store %arg5[%c0_5, %c0_6], %10 {strides = array<i32>} : memref<128x128xf32, #tpu.memory_space<vmem>>, vector<128x128xf32>,
    %c0_i32_7 = arith.constant 0 : i32
    %12 = arith.cmpi eq, %arg1, %c0_i32_7 : i32
    %13 = arith.extui %12 : i1 to i32
    %c0_i32_8 = arith.constant 0 : i32
    %14 = arith.cmpi ne, %13, %c0_i32_8 : i32
    scf.if %14 {
      %c0_9 = arith.constant 0 : index
      %c0_10 = arith.constant 0 : index
      %15 = vector.load %arg5[%c0_9, %c0_10] : memref<128x128xf32, #tpu.memory_space<vmem>>, vector<128x128xf32>
      %c0_11 = arith.constant 0 : index
      %c0_12 = arith.constant 0 : index
      %16 = vector.load %arg4[%c0_11, %c0_12] : memref<128x128xf32, #tpu.memory_space<vmem>>, vector<128x128xf32>
      tpu.vector_store %arg4[%c0_11, %c0_12], %15 {strides = array<i32>} : memref<128x128xf32, #tpu.memory_space<vmem>>, vector<128x128xf32>,
    } else {
    }
    return
  }
  func.func @transform_0(%arg0: i32, %arg1: i32) -> (i32, i32) {
    %c0_i32 = arith.constant 0 : i32
    return %arg0, %arg1 : i32, i32
  }
  func.func @transform_1(%arg0: i32, %arg1: i32) -> (i32, i32) {
    %c0_i32 = arith.constant 0 : i32
    %c0_i32_0 = arith.constant 0 : i32
    %c0_i32_1 = arith.constant 0 : i32
    return %c0_i32, %c0_i32_0 : i32, i32
  }
  func.func @transform_2(%arg0: i32, %arg1: i32) -> (i32, i32) {
    %c0_i32 = arith.constant 0 : i32
    %c0_i32_0 = arith.constant 0 : i32
    return %arg0, %c0_i32 : i32, i32
  }
}

module attributes {stable_mosaic.version = 11 : i64} {
  func.func @_mm_bres_kernel(%arg0: i32, %arg1: i32, %arg2: memref<128x128xf32, #tpu.memory_space<vmem>>, %arg3: memref<128x128xf32, #tpu.memory_space<vmem>>, %arg4: memref<128x128xf32, #tpu.memory_space<vmem>>, %arg5: memref<128x128xf32, #tpu.memory_space<vmem>>) attributes {dimension_semantics = [#tpu.dimension_semantics<parallel>, #tpu.dimension_semantics<arbitrary>], iteration_bounds = array<i64: 1, 1>, scalar_prefetch = 0 : i64, scratch_operands = 1 : i64, tpu.core_type = #tpu.core_type<tc>, window_params = [{transform_indices = @transform_0, window_bounds = array<i64: 128, 128>}, {pipeline_mode = #tpu.pipeline_mode<synchronous>, transform_indices = @transform_1, window_bounds = array<i64: 128, 128>}, {transform_indices = @transform_2, window_bounds = array<i64: 128, 128>}]} {
    %c0_i32 = arith.constant 0 : i32
    %0 = arith.cmpi eq, %arg1, %c0_i32 : i32
    %1 = arith.extui %0 : i1 to i32
    %c0_i32_0 = arith.constant 0 : i32
    %2 = arith.cmpi ne, %1, %c0_i32_0 : i32
    scf.if %2 {
      %cst_9 = arith.constant 0.000000e+00 : f32
      %15 = vector.broadcast %cst_9 : f32 to vector<128x128xf32>
      %c0_10 = arith.constant 0 : index
      %c0_11 = arith.constant 0 : index
      %16 = vector.load %arg5[%c0_10, %c0_11] : memref<128x128xf32, #tpu.memory_space<vmem>>, vector<128x128xf32>
      tpu.vector_store %arg5[%c0_10, %c0_11], %15 {strides = array<i32>} : memref<128x128xf32, #tpu.memory_space<vmem>>, vector<128x128xf32>,
    } else {
    }
    %c128_i32 = arith.constant 128 : i32
    %3 = arith.muli %arg1, %c128_i32 : i32
    %4 = tpu.assume_multiple %3, 128 : i32
    %c0 = arith.constant 0 : index
    %c0_1 = arith.constant 0 : index
    %5 = vector.load %arg5[%c0, %c0_1] : memref<128x128xf32, #tpu.memory_space<vmem>>, vector<128x128xf32>
    %c0_2 = arith.constant 0 : index
    %c0_3 = arith.constant 0 : index
    %6 = vector.load %arg2[%c0_2, %c0_3] : memref<128x128xf32, #tpu.memory_space<vmem>>, vector<128x128xf32>
    %7 = arith.index_cast %4 : i32 to index
    %c0_4 = arith.constant 0 : index
    %8 = vector.load %arg3[%7, %c0_4] : memref<128x128xf32, #tpu.memory_space<vmem>>, vector<128x128xf32>
    %cst = arith.constant dense<0.000000e+00> : vector<128x128xf32>
    %9 = tpu.matmul %6, %8, %cst {dimension_numbers = #tpu.dot_dimension_numbers<[1], [0], [0], [1], [0, 0, 1, 1], [], []>} : vector<128x128xf32>, vector<128x128xf32>, vector<128x128xf32> -> vector<128x128xf32>
    %10 = arith.addf %5, %9 : vector<128x128xf32>
    %c0_5 = arith.constant 0 : index
    %c0_6 = arith.constant 0 : index
    %11 = vector.load %arg5[%c0_5, %c0_6] : memref<128x128xf32, #tpu.memory_space<vmem>>, vector<128x128xf32>
    tpu.vector_store %arg5[%c0_5, %c0_6], %10 {strides = array<i32>} : memref<128x128xf32, #tpu.memory_space<vmem>>, vector<128x128xf32>,
    %c0_i32_7 = arith.constant 0 : i32
    %12 = arith.cmpi eq, %arg1, %c0_i32_7 : i32
    %13 = arith.extui %12 : i1 to i32
    %c0_i32_8 = arith.constant 0 : i32
    %14 = arith.cmpi ne, %13, %c0_i32_8 : i32
    scf.if %14 {
      %c0_9 = arith.constant 0 : index
      %c0_10 = arith.constant 0 : index
      %15 = vector.load %arg5[%c0_9, %c0_10] : memref<128x128xf32, #tpu.memory_space<vmem>>, vector<128x128xf32>
      %c0_11 = arith.constant 0 : index
      %c0_12 = arith.constant 0 : index
      %16 = vector.load %arg4[%c0_11, %c0_12] : memref<128x128xf32, #tpu.memory_space<vmem>>, vector<128x128xf32>
      tpu.vector_store %arg4[%c0_11, %c0_12], %15 {strides = array<i32>} : memref<128x128xf32, #tpu.memory_space<vmem>>, vector<128x128xf32>,
    } else {
    }
    return
  }
  func.func @transform_0(%arg0: i32, %arg1: i32) -> (i32, i32) {
    %c0_i32 = arith.constant 0 : i32
    return %arg0, %arg1 : i32, i32
  }
  func.func @transform_1(%arg0: i32, %arg1: i32) -> (i32, i32) {
    %c0_i32 = arith.constant 0 : i32
    %c0_i32_0 = arith.constant 0 : i32
    %c0_i32_1 = arith.constant 0 : i32
    return %c0_i32, %c0_i32_0 : i32, i32
  }
  func.func @transform_2(%arg0: i32, %arg1: i32) -> (i32, i32) {
    %c0_i32 = arith.constant 0 : i32
    %c0_i32_0 = arith.constant 0 : i32
    return %arg0, %c0_i32 : i32, i32
  }
}

module attributes {stable_mosaic.version = 11 : i64} {
  func.func @_mm_bres_kernel(%arg0: i32, %arg1: i32, %arg2: memref<128x128xf32, #tpu.memory_space<vmem>>, %arg3: memref<128x128xf32, #tpu.memory_space<vmem>>, %arg4: memref<128x128xf32, #tpu.memory_space<vmem>>, %arg5: memref<128x128xf32, #tpu.memory_space<vmem>>) attributes {dimension_semantics = [#tpu.dimension_semantics<parallel>, #tpu.dimension_semantics<arbitrary>], iteration_bounds = array<i64: 1, 1>, scalar_prefetch = 0 : i64, scratch_operands = 1 : i64, tpu.core_type = #tpu.core_type<tc>, window_params = [{transform_indices = @transform_0, window_bounds = array<i64: 128, 128>}, {pipeline_mode = #tpu.pipeline_mode<synchronous>, transform_indices = @transform_1, window_bounds = array<i64: 128, 128>}, {transform_indices = @transform_2, window_bounds = array<i64: 128, 128>}]} {
    %c0_i32 = arith.constant 0 : i32
    %0 = arith.cmpi eq, %arg1, %c0_i32 : i32
    %1 = arith.extui %0 : i1 to i32
    %c0_i32_0 = arith.constant 0 : i32
    %2 = arith.cmpi ne, %1, %c0_i32_0 : i32
    scf.if %2 {
      %cst_9 = arith.constant 0.000000e+00 : f32
      %15 = vector.broadcast %cst_9 : f32 to vector<128x128xf32>
      %c0_10 = arith.constant 0 : index
      %c0_11 = arith.constant 0 : index
      %16 = vector.load %arg5[%c0_10, %c0_11] : memref<128x128xf32, #tpu.memory_space<vmem>>, vector<128x128xf32>
      tpu.vector_store %arg5[%c0_10, %c0_11], %15 {strides = array<i32>} : memref<128x128xf32, #tpu.memory_space<vmem>>, vector<128x128xf32>,
    } else {
    }
    %c128_i32 = arith.constant 128 : i32
    %3 = arith.muli %arg1, %c128_i32 : i32
    %4 = tpu.assume_multiple %3, 128 : i32
    %c0 = arith.constant 0 : index
    %c0_1 = arith.constant 0 : index
    %5 = vector.load %arg5[%c0, %c0_1] : memref<128x128xf32, #tpu.memory_space<vmem>>, vector<128x128xf32>
    %c0_2 = arith.constant 0 : index
    %c0_3 = arith.constant 0 : index
    %6 = vector.load %arg2[%c0_2, %c0_3] : memref<128x128xf32, #tpu.memory_space<vmem>>, vector<128x128xf32>
    %7 = arith.index_cast %4 : i32 to index
    %c0_4 = arith.constant 0 : index
    %8 = vector.load %arg3[%7, %c0_4] : memref<128x128xf32, #tpu.memory_space<vmem>>, vector<128x128xf32>
    %cst = arith.constant dense<0.000000e+00> : vector<128x128xf32>
    %9 = tpu.matmul %6, %8, %cst {dimension_numbers = #tpu.dot_dimension_numbers<[1], [0], [0], [1], [0, 0, 1, 1], [], []>} : vector<128x128xf32>, vector<128x128xf32>, vector<128x128xf32> -> vector<128x128xf32>
    %10 = arith.addf %5, %9 : vector<128x128xf32>
    %c0_5 = arith.constant 0 : index
    %c0_6 = arith.constant 0 : index
    %11 = vector.load %arg5[%c0_5, %c0_6] : memref<128x128xf32, #tpu.memory_space<vmem>>, vector<128x128xf32>
    tpu.vector_store %arg5[%c0_5, %c0_6], %10 {strides = array<i32>} : memref<128x128xf32, #tpu.memory_space<vmem>>, vector<128x128xf32>,
    %c0_i32_7 = arith.constant 0 : i32
    %12 = arith.cmpi eq, %arg1, %c0_i32_7 : i32
    %13 = arith.extui %12 : i1 to i32
    %c0_i32_8 = arith.constant 0 : i32
    %14 = arith.cmpi ne, %13, %c0_i32_8 : i32
    scf.if %14 {
      %c0_9 = arith.constant 0 : index
      %c0_10 = arith.constant 0 : index
      %15 = vector.load %arg5[%c0_9, %c0_10] : memref<128x128xf32, #tpu.memory_space<vmem>>, vector<128x128xf32>
      %c0_11 = arith.constant 0 : index
      %c0_12 = arith.constant 0 : index
      %16 = vector.load %arg4[%c0_11, %c0_12] : memref<128x128xf32, #tpu.memory_space<vmem>>, vector<128x128xf32>
      tpu.vector_store %arg4[%c0_11, %c0_12], %15 {strides = array<i32>} : memref<128x128xf32, #tpu.memory_space<vmem>>, vector<128x128xf32>,
    } else {
    }
    return
  }
  func.func @transform_0(%arg0: i32, %arg1: i32) -> (i32, i32) {
    %c0_i32 = arith.constant 0 : i32
    return %arg0, %arg1 : i32, i32
  }
  func.func @transform_1(%arg0: i32, %arg1: i32) -> (i32, i32) {
    %c0_i32 = arith.constant 0 : i32
    %c0_i32_0 = arith.constant 0 : i32
    %c0_i32_1 = arith.constant 0 : i32
    return %c0_i32, %c0_i32_0 : i32, i32
  }
  func.func @transform_2(%arg0: i32, %arg1: i32) -> (i32, i32) {
    %c0_i32 = arith.constant 0 : i32
    %c0_i32_0 = arith.constant 0 : i32
    return %arg0, %c0_i32 : i32, i32
  }
}

module attributes {stable_mosaic.version = 11 : i64} {
  func.func @_mm_bres_kernel(%arg0: i32, %arg1: i32, %arg2: memref<128x128xf32, #tpu.memory_space<vmem>>, %arg3: memref<128x128xf32, #tpu.memory_space<vmem>>, %arg4: memref<128x128xf32, #tpu.memory_space<vmem>>, %arg5: memref<128x128xf32, #tpu.memory_space<vmem>>) attributes {dimension_semantics = [#tpu.dimension_semantics<parallel>, #tpu.dimension_semantics<arbitrary>], iteration_bounds = array<i64: 1, 1>, scalar_prefetch = 0 : i64, scratch_operands = 1 : i64, tpu.core_type = #tpu.core_type<tc>, window_params = [{transform_indices = @transform_0, window_bounds = array<i64: 128, 128>}, {pipeline_mode = #tpu.pipeline_mode<synchronous>, transform_indices = @transform_1, window_bounds = array<i64: 128, 128>}, {transform_indices = @transform_2, window_bounds = array<i64: 128, 128>}]} {
    %c0_i32 = arith.constant 0 : i32
    %0 = arith.cmpi eq, %arg1, %c0_i32 : i32
    %1 = arith.extui %0 : i1 to i32
    %c0_i32_0 = arith.constant 0 : i32
    %2 = arith.cmpi ne, %1, %c0_i32_0 : i32
    scf.if %2 {
      %cst_9 = arith.constant 0.000000e+00 : f32
      %15 = vector.broadcast %cst_9 : f32 to vector<128x128xf32>
      %c0_10 = arith.constant 0 : index
      %c0_11 = arith.constant 0 : index
      %16 = vector.load %arg5[%c0_10, %c0_11] : memref<128x128xf32, #tpu.memory_space<vmem>>, vector<128x128xf32>
      tpu.vector_store %arg5[%c0_10, %c0_11], %15 {strides = array<i32>} : memref<128x128xf32, #tpu.memory_space<vmem>>, vector<128x128xf32>,
    } else {
    }
    %c128_i32 = arith.constant 128 : i32
    %3 = arith.muli %arg1, %c128_i32 : i32
    %4 = tpu.assume_multiple %3, 128 : i32
    %c0 = arith.constant 0 : index
    %c0_1 = arith.constant 0 : index
    %5 = vector.load %arg5[%c0, %c0_1] : memref<128x128xf32, #tpu.memory_space<vmem>>, vector<128x128xf32>
    %c0_2 = arith.constant 0 : index
    %c0_3 = arith.constant 0 : index
    %6 = vector.load %arg2[%c0_2, %c0_3] : memref<128x128xf32, #tpu.memory_space<vmem>>, vector<128x128xf32>
    %7 = arith.index_cast %4 : i32 to index
    %c0_4 = arith.constant 0 : index
    %8 = vector.load %arg3[%7, %c0_4] : memref<128x128xf32, #tpu.memory_space<vmem>>, vector<128x128xf32>
    %cst = arith.constant dense<0.000000e+00> : vector<128x128xf32>
    %9 = tpu.matmul %6, %8, %cst {dimension_numbers = #tpu.dot_dimension_numbers<[1], [0], [0], [1], [0, 0, 1, 1], [], []>} : vector<128x128xf32>, vector<128x128xf32>, vector<128x128xf32> -> vector<128x128xf32>
    %10 = arith.addf %5, %9 : vector<128x128xf32>
    %c0_5 = arith.constant 0 : index
    %c0_6 = arith.constant 0 : index
    %11 = vector.load %arg5[%c0_5, %c0_6] : memref<128x128xf32, #tpu.memory_space<vmem>>, vector<128x128xf32>
    tpu.vector_store %arg5[%c0_5, %c0_6], %10 {strides = array<i32>} : memref<128x128xf32, #tpu.memory_space<vmem>>, vector<128x128xf32>,
    %c0_i32_7 = arith.constant 0 : i32
    %12 = arith.cmpi eq, %arg1, %c0_i32_7 : i32
    %13 = arith.extui %12 : i1 to i32
    %c0_i32_8 = arith.constant 0 : i32
    %14 = arith.cmpi ne, %13, %c0_i32_8 : i32
    scf.if %14 {
      %c0_9 = arith.constant 0 : index
      %c0_10 = arith.constant 0 : index
      %15 = vector.load %arg5[%c0_9, %c0_10] : memref<128x128xf32, #tpu.memory_space<vmem>>, vector<128x128xf32>
      %cst_11 = arith.constant 0.000000e+00 : f32
      %16 = vector.broadcast %cst_11 : f32 to vector<128x128xf32>
      %17 = arith.maximumf %15, %16 : vector<128x128xf32>
      %c0_12 = arith.constant 0 : index
      %c0_13 = arith.constant 0 : index
      %18 = vector.load %arg4[%c0_12, %c0_13] : memref<128x128xf32, #tpu.memory_space<vmem>>, vector<128x128xf32>
      tpu.vector_store %arg4[%c0_12, %c0_13], %17 {strides = array<i32>} : memref<128x128xf32, #tpu.memory_space<vmem>>, vector<128x128xf32>,
    } else {
    }
    return
  }
  func.func @transform_0(%arg0: i32, %arg1: i32) -> (i32, i32) {
    %c0_i32 = arith.constant 0 : i32
    return %arg0, %arg1 : i32, i32
  }
  func.func @transform_1(%arg0: i32, %arg1: i32) -> (i32, i32) {
    %c0_i32 = arith.constant 0 : i32
    %c0_i32_0 = arith.constant 0 : i32
    %c0_i32_1 = arith.constant 0 : i32
    return %c0_i32, %c0_i32_0 : i32, i32
  }
  func.func @transform_2(%arg0: i32, %arg1: i32) -> (i32, i32) {
    %c0_i32 = arith.constant 0 : i32
    %c0_i32_0 = arith.constant 0 : i32
    return %arg0, %c0_i32 : i32, i32
  }
}

</mosaic_0001>

<bundles_post_ra>
// kernel: gcn_forward_padded.7
= control target key start
LH: loop header
LB: loop body
LE: loop exit
PB: predicated region body
PF: predicated region fallthrough
CT: control target
= control target key end

     0   :  { %7 = vsyncpa [#allocation4], 0  ;;  %s432_s0 = inlined_call_operand.hbm [shape: f32[128,128], index: 0, kind: input, shape index: {}]   ;;  %s433_s1 = inlined_call_operand.vmem [shape: f32[128,128], index: 1, kind: input, shape index: {}]   ;;  %s434_s2 = inlined_call_operand.hbm [shape: f32[128,128], index: 2, kind: output, shape index: {}]  }
   0x1   :  { %8 = vsyncpa [#allocation5], 0  ;;  %s13_s11 = sshll.u32 %s432_s0, 4  ;;  %s353_s12 = smov [#allocation3]   ;;  %s14_s11 = int_to_ptr.hbm [resolvable:$true] %s13_s11 }
   0x2   :  { %s15_s13 = sshll.u32 %s353_s12, 4  ;;  %s354_s14 = smov 128   ;;  %s16_s13 = int_to_ptr.vmem [resolvable:$true] %s15_s13 }
   0x3   :  { %s355_s15 = smov 8  }
   0x4   :  { %21 = dma.hbm_to_vmem [thread:$0]  %s14_s11, 2048, %s16_s13, [#allocation4], %s354_s14, %s354_s14, %s355_s15  }
   0x5   :  { %349 = dma.done.wait [#allocation4], 2048  }
   0x6   :  { %350 = vsyncadd [#allocation4], 4294965248  ;;  %v97_v0 = vld [vmem:[%s433_s1 + $0x78] sm:$0xff]  ;;  %v96_v1 = vld [vmem:[%s433_s1 + $0x70] sm:$0xff]  ;;  %s236_s23 = sshll.u32 %s434_s2, 4  ;;  %s237_s23 = int_to_ptr.hbm [resolvable:$true] %s236_s23 }
   0x7   :  { %250 = vmatpush.msra.mxu2 %v97_v0  ;;  %251 = vmatpush.msra.mxu3 %v97_v0  ;;  %v95_v2 = vld [vmem:[%s433_s1 + $0x68] sm:$0xff]  ;;  %v94_v3 = vld [vmem:[%s433_s1 + $0x60] sm:$0xff]  ;;  %v93_v4 = vld [vmem:[%s433_s1 + $0x58] sm:$0xff] }
   0x8   :  { %98 = vmatpush.msra.mxu0 %v97_v0  ;;  %249 = vmatpush.msra.mxu1 %v97_v0  ;;  %v92_v5 = vld [vmem:[%s433_s1 + $0x50] sm:$0xff]  ;;  %v91_v6 = vld [vmem:[%s433_s1 + $0x48] sm:$0xff]  ;;  %v90_v7 = vld [vmem:[%s433_s1 + $0x40] sm:$0xff] }
   0x9   :  { %253 = vmatpush.msra.mxu2 %v96_v1  ;;  %254 = vmatpush.msra.mxu3 %v96_v1  ;;  %v89_v8 = vld [vmem:[%s433_s1 + $0x38] sm:$0xff]  ;;  %v88_v9 = vld [vmem:[%s433_s1 + $0x30] sm:$0xff]  ;;  %v87_v10 = vld [vmem:[%s433_s1 + $0x28] sm:$0xff] }
   0xa   :  { %99 = vmatpush.msra.mxu0 %v96_v1  ;;  %252 = vmatpush.msra.mxu1 %v96_v1  ;;  %v86_v11 = vld [vmem:[%s433_s1 + $0x20] sm:$0xff]  ;;  %v85_v12 = vld [vmem:[%s433_s1 + $0x18] sm:$0xff]  ;;  %v84_v13 = vld [vmem:[%s433_s1 + $0x10] sm:$0xff] }
   0xb   :  { %256 = vmatpush.msra.mxu2 %v95_v2  ;;  %257 = vmatpush.msra.mxu3 %v95_v2  ;;  %v83_v14 = vld [vmem:[%s433_s1 + $0x8] sm:$0xff]  ;;  %v82_v15 = vld [vmem:[%s433_s1] sm:$0xff]  ;;  %v75_v24 = vld [vmem:[#allocation3 + $0x50] sm:$0xff]  ;;  %s356_s1 = smov [#allocation6]  }
   0xc   :  { %100 = vmatpush.msra.mxu0 %v95_v2  ;;  %255 = vmatpush.msra.mxu1 %v95_v2  ;;  %v73_v16 = vld [vmem:[#allocation3 + $0x40] sm:$0xff]  ;;  %v74_v20 = vld [vmem:[#allocation3 + $0x48] sm:$0xff]  ;;  %v79_v25 = vld [vmem:[#allocation3 + $0x70] sm:$0xff]  ;;  %s234_s20 = sshll.u32 %s356_s1, 4  ;;  %s235_s20 = int_to_ptr.vmem [resolvable:$true] %s234_s20 }
   0xd   :  { %259 = vmatpush.msra.mxu2 %v94_v3  ;;  %260 = vmatpush.msra.mxu3 %v94_v3  ;;  %v77_v17 = vld [vmem:[#allocation3 + $0x60] sm:$0xff]  ;;  %v78_v21 = vld [vmem:[#allocation3 + $0x68] sm:$0xff]  ;;  %v67_v26 = vld [vmem:[#allocation3 + $0x10] sm:$0xff] }
   0xe   :  { %101 = vmatpush.msra.mxu0 %v94_v3  ;;  %258 = vmatpush.msra.mxu1 %v94_v3  ;;  %v65_v18 = vld [vmem:[#allocation3] sm:$0xff]  ;;  %v66_v22 = vld [vmem:[#allocation3 + $0x8] sm:$0xff]  ;;  %v71_v27 = vld [vmem:[#allocation3 + $0x30] sm:$0xff] }
   0xf   :  { %262 = vmatpush.msra.mxu2 %v93_v4  ;;  %263 = vmatpush.msra.mxu3 %v93_v4  ;;  %v69_v19 = vld [vmem:[#allocation3 + $0x20] sm:$0xff]  ;;  %v70_v23 = vld [vmem:[#allocation3 + $0x28] sm:$0xff]  ;;  %v76_v28 = vld [vmem:[#allocation3 + $0x58] sm:$0xff] }
  0x10   :  { %102 = vmatpush.msra.mxu0 %v93_v4  ;;  %261 = vmatpush.msra.mxu1 %v93_v4  ;;  %v80_v29 = vld [vmem:[#allocation3 + $0x78] sm:$0xff] }
  0x11   :  { %265 = vmatpush.msra.mxu2 %v92_v5  ;;  %266 = vmatpush.msra.mxu3 %v92_v5  ;;  %v68_v30 = vld [vmem:[#allocation3 + $0x18] sm:$0xff] }
  0x12   :  { %103 = vmatpush.msra.mxu0 %v92_v5  ;;  %264 = vmatpush.msra.mxu1 %v92_v5  ;;  %v72_v31 = vld [vmem:[#allocation3 + $0x38] sm:$0xff] }
  0x13   :  { %268 = vmatpush.msra.mxu2 %v91_v6  ;;  %269 = vmatpush.msra.mxu3 %v91_v6 }
  0x14   :  { %104 = vmatpush.msra.mxu0 %v91_v6  ;;  %267 = vmatpush.msra.mxu1 %v91_v6 }
  0x15   :  { %271 = vmatpush.msra.mxu2 %v90_v7  ;;  %272 = vmatpush.msra.mxu3 %v90_v7 }
  0x16   :  { %105 = vmatpush.msra.mxu0 %v90_v7  ;;  %270 = vmatpush.msra.mxu1 %v90_v7 }
  0x17   :  { %274 = vmatpush.msra.mxu2 %v89_v8  ;;  %275 = vmatpush.msra.mxu3 %v89_v8 }
  0x18   :  { %106 = vmatpush.msra.mxu0 %v89_v8  ;;  %273 = vmatpush.msra.mxu1 %v89_v8 }
  0x19   :  { %277 = vmatpush.msra.mxu2 %v88_v9  ;;  %278 = vmatpush.msra.mxu3 %v88_v9 }
  0x1a   :  { %107 = vmatpush.msra.mxu0 %v88_v9  ;;  %276 = vmatpush.msra.mxu1 %v88_v9 }
  0x1b   :  { %280 = vmatpush.msra.mxu2 %v87_v10  ;;  %281 = vmatpush.msra.mxu3 %v87_v10 }
  0x1c   :  { %108 = vmatpush.msra.mxu0 %v87_v10  ;;  %279 = vmatpush.msra.mxu1 %v87_v10 }
  0x1d   :  { %283 = vmatpush.msra.mxu2 %v86_v11  ;;  %284 = vmatpush.msra.mxu3 %v86_v11 }
  0x1e   :  { %109 = vmatpush.msra.mxu0 %v86_v11  ;;  %282 = vmatpush.msra.mxu1 %v86_v11 }
  0x1f   :  { %286 = vmatpush.msra.mxu2 %v85_v12  ;;  %287 = vmatpush.msra.mxu3 %v85_v12 }
  0x20   :  { %110 = vmatpush.msra.mxu0 %v85_v12  ;;  %285 = vmatpush.msra.mxu1 %v85_v12 }
  0x21   :  { %289 = vmatpush.msra.mxu2 %v84_v13  ;;  %290 = vmatpush.msra.mxu3 %v84_v13 }
  0x22   :  { %111 = vmatpush.msra.mxu0 %v84_v13  ;;  %288 = vmatpush.msra.mxu1 %v84_v13 }
  0x23   :  { %292 = vmatpush.msra.mxu2 %v83_v14  ;;  %293 = vmatpush.msra.mxu3 %v83_v14 }
  0x24   :  { %112 = vmatpush.msra.mxu0 %v83_v14  ;;  %291 = vmatpush.msra.mxu1 %v83_v14 }
  0x25   :  { %295 = vmatpush.msra.mxu2 %v82_v15  ;;  %296 = vmatpush.msra.mxu3 %v82_v15 }
  0x26   :  { %138 = vmatmul.f32.vlgmr.msra.gmra.mxu2 %v73_v16  ;;  %150 = vmatmul.f32.vlgmr.msra.gmra.mxu3 %v77_v17 }
  0x27   :  { %113 = vmatpush.msra.mxu0 %v82_v15  ;;  %294 = vmatpush.msra.mxu1 %v82_v15 }
  0x28   :  { %114 = vmatmul.f32.vlgmr.msra.gmra.mxu0 %v65_v18  ;;  %126 = vmatmul.f32.vlgmr.msra.gmra.mxu1 %v69_v19 }
  0x2e   :  { %141 = vmatmul.f32.gmra.mxu2 %v74_v20  ;;  %153 = vmatmul.f32.gmra.mxu3 %v78_v21 }
  0x30   :  { %117 = vmatmul.f32.gmra.mxu0 %v66_v22  ;;  %129 = vmatmul.f32.gmra.mxu1 %v70_v23 }
  0x36   :  { %144 = vmatmul.f32.gmra.mxu2 %v75_v24  ;;  %156 = vmatmul.f32.gmra.mxu3 %v79_v25 }
  0x38   :  { %120 = vmatmul.f32.gmra.mxu0 %v67_v26  ;;  %132 = vmatmul.f32.gmra.mxu1 %v71_v27 }
  0x3e   :  { %147 = vmatmul.f32.gmra.mxu2 %v76_v28  ;;  %159 = vmatmul.f32.gmra.mxu3 %v80_v29 }
  0x40   :  { %123 = vmatmul.f32.gmra.mxu0 %v68_v30  ;;  %135 = vmatmul.f32.gmra.mxu1 %v72_v31 }
  0xa5   :  { %v115_v32 = vpop.f32.mrf.mxu0  ;;  %v127_v33 = vpop.f32.mrf.mxu1 }
  0xa6   :  { %214 = vst [vmem:[#allocation6] sm:$0xff] %v115_v32 }
  0xa7   :  { %218 = vst [vmem:[#allocation6 + $0x20] sm:$0xff] %v127_v33 }
  0xa9   :  { %v139_v34 = vpop.f32.mrf.mxu2  ;;  %v151_v35 = vpop.f32.mrf.mxu3 }
  0xaa   :  { %222 = vst [vmem:[#allocation6 + $0x40] sm:$0xff] %v139_v34 }
  0xab   :  { %226 = vst [vmem:[#allocation6 + $0x60] sm:$0xff] %v151_v35 }
  0xad   :  { %v118_v36 = vpop.f32.mrf.mxu0  ;;  %v130_v37 = vpop.f32.mrf.mxu1 }
  0xae   :  { %215 = vst [vmem:[#allocation6 + $0x8] sm:$0xff] %v118_v36 }
  0xaf   :  { %219 = vst [vmem:[#allocation6 + $0x28] sm:$0xff] %v130_v37 }
  0xb1   :  { %v142_v38 = vpop.f32.mrf.mxu2  ;;  %v154_v39 = vpop.f32.mrf.mxu3 }
  0xb2   :  { %223 = vst [vmem:[#allocation6 + $0x48] sm:$0xff] %v142_v38 }
  0xb3   :  { %227 = vst [vmem:[#allocation6 + $0x68] sm:$0xff] %v154_v39 }
  0xb5   :  { %v121_v40 = vpop.f32.mrf.mxu0  ;;  %v133_v41 = vpop.f32.mrf.mxu1 }
  0xb6   :  { %216 = vst [vmem:[#allocation6 + $0x10] sm:$0xff] %v121_v40 }
  0xb7   :  { %220 = vst [vmem:[#allocation6 + $0x30] sm:$0xff] %v133_v41 }
  0xb9   :  { %v145_v42 = vpop.f32.mrf.mxu2  ;;  %v157_v43 = vpop.f32.mrf.mxu3 }
  0xba   :  { %224 = vst [vmem:[#allocation6 + $0x50] sm:$0xff] %v145_v42 }
  0xbb   :  { %228 = vst [vmem:[#allocation6 + $0x70] sm:$0xff] %v157_v43 }
  0xbd   :  { %v124_v44 = vpop.f32.mrf.mxu0  ;;  %v136_v45 = vpop.f32.mrf.mxu1 }
  0xbe   :  { %217 = vst [vmem:[#allocation6 + $0x18] sm:$0xff] %v124_v44 }
  0xbf   :  { %221 = vst [vmem:[#allocation6 + $0x38] sm:$0xff] %v136_v45 }
  0xc1   :  { %v148_v46 = vpop.f32.mrf.mxu2  ;;  %v160_v47 = vpop.f32.mrf.mxu3 }
  0xc2   :  { %225 = vst [vmem:[#allocation6 + $0x58] sm:$0xff] %v148_v46 }
  0xc3   :  { %229 = vst [vmem:[#allocation6 + $0x78] sm:$0xff] %v160_v47 }
  0xc4   :  { %242 = dma.vmem_to_hbm [thread:$0]  %s235_s20, 2048, %s237_s23, [#allocation5], %s354_s14, %s354_s14, %s355_s15  }
  0xc5   :  { %351 = dma.done.wait [#allocation5], 2048  }
  0xc6   :  { %352 = vsyncadd [#allocation5], 4294965248 }
  0xc7   :  { %247 = vsyncpa [#allocation4], 1 }
  0xc8   :  { %248 = vsyncpa [#allocation5], 1 }

// kernel: gcn_forward_padded.4
= control target key start
LH: loop header
LB: loop body
LE: loop exit
PB: predicated region body
PF: predicated region fallthrough
CT: control target
= control target key end

     0   :  { %7 = vsyncpa [#allocation4], 0  ;;  %s428_s0 = inlined_call_operand.hbm [shape: f32[128,128], index: 0, kind: input, shape index: {}]   ;;  %s429_s1 = inlined_call_operand.hbm [shape: f32[128,128], index: 1, kind: input, shape index: {}]   ;;  %s430_s2 = inlined_call_operand.vmem [shape: f32[128,128], index: 2, kind: output, shape index: {}]  }
   0x1   :  { %s13_s11 = sshll.u32 %s428_s0, 4  ;;  %s14_s11 = int_to_ptr.hbm [resolvable:$true] %s13_s11 }
   0x2   :  { %8 = vsyncpa [#allocation6], 0  ;;  %s355_s12 = smov [#allocation3]   ;;  %s26_s16 = sshll.u32 %s429_s1, 4  ;;  %s27_s16 = int_to_ptr.hbm [resolvable:$true] %s26_s16 }
   0x3   :  { %s15_s13 = sshll.u32 %s355_s12, 4  ;;  %s356_s17 = smov 128   ;;  %s16_s13 = int_to_ptr.vmem [resolvable:$true] %s15_s13 }
   0x4   :  { %s357_s18 = smov 8   ;;  %s358_s19 = smov [#allocation5]  }
   0x5   :  { %21 = dma.hbm_to_vmem [thread:$0]  %s14_s11, 2048, %s16_s13, [#allocation4], %s356_s17, %s356_s17, %s357_s18  }
   0x6   :  { %s28_s20 = sshll.u32 %s358_s19, 4  ;;  %s29_s20 = int_to_ptr.vmem [resolvable:$true] %s28_s20 }
   0x7   :  { %34 = dma.hbm_to_vmem [thread:$0]  %s27_s16, 2048, %s29_s20, [#allocation6], %s356_s17, %s356_s17, %s357_s18  }
   0x8   :  { %351 = dma.done.wait [#allocation4], 2048  }
   0x9   :  { %352 = vsyncadd [#allocation4], 4294965248 }
   0xa   :  { %353 = dma.done.wait [#allocation6], 2048  }
   0xb   :  { %354 = vsyncadd [#allocation6], 4294965248  ;;  %v112_v0 = vld [vmem:[#allocation5 + $0x78] sm:$0xff]  ;;  %v111_v1 = vld [vmem:[#allocation5 + $0x70] sm:$0xff] }
   0xc   :  { %252 = vmatpush.msra.mxu2 %v112_v0  ;;  %253 = vmatpush.msra.mxu3 %v112_v0  ;;  %v110_v2 = vld [vmem:[#allocation5 + $0x68] sm:$0xff]  ;;  %v109_v3 = vld [vmem:[#allocation5 + $0x60] sm:$0xff]  ;;  %v108_v4 = vld [vmem:[#allocation5 + $0x58] sm:$0xff] }
   0xd   :  { %113 = vmatpush.msra.mxu0 %v112_v0  ;;  %251 = vmatpush.msra.mxu1 %v112_v0  ;;  %v107_v5 = vld [vmem:[#allocation5 + $0x50] sm:$0xff]  ;;  %v106_v6 = vld [vmem:[#allocation5 + $0x48] sm:$0xff]  ;;  %v105_v7 = vld [vmem:[#allocation5 + $0x40] sm:$0xff] }
   0xe   :  { %255 = vmatpush.msra.mxu2 %v111_v1  ;;  %256 = vmatpush.msra.mxu3 %v111_v1  ;;  %v104_v8 = vld [vmem:[#allocation5 + $0x38] sm:$0xff]  ;;  %v103_v9 = vld [vmem:[#allocation5 + $0x30] sm:$0xff]  ;;  %v102_v10 = vld [vmem:[#allocation5 + $0x28] sm:$0xff] }
   0xf   :  { %114 = vmatpush.msra.mxu0 %v111_v1  ;;  %254 = vmatpush.msra.mxu1 %v111_v1  ;;  %v101_v11 = vld [vmem:[#allocation5 + $0x20] sm:$0xff]  ;;  %v100_v12 = vld [vmem:[#allocation5 + $0x18] sm:$0xff]  ;;  %v99_v13 = vld [vmem:[#allocation5 + $0x10] sm:$0xff] }
  0x10   :  { %258 = vmatpush.msra.mxu2 %v110_v2  ;;  %259 = vmatpush.msra.mxu3 %v110_v2  ;;  %v98_v14 = vld [vmem:[#allocation5 + $0x8] sm:$0xff]  ;;  %v97_v15 = vld [vmem:[#allocation5] sm:$0xff]  ;;  %v90_v24 = vld [vmem:[#allocation3 + $0x50] sm:$0xff] }
  0x11   :  { %115 = vmatpush.msra.mxu0 %v110_v2  ;;  %257 = vmatpush.msra.mxu1 %v110_v2  ;;  %v88_v16 = vld [vmem:[#allocation3 + $0x40] sm:$0xff]  ;;  %v89_v20 = vld [vmem:[#allocation3 + $0x48] sm:$0xff]  ;;  %v94_v25 = vld [vmem:[#allocation3 + $0x70] sm:$0xff] }
  0x12   :  { %261 = vmatpush.msra.mxu2 %v109_v3  ;;  %262 = vmatpush.msra.mxu3 %v109_v3  ;;  %v92_v17 = vld [vmem:[#allocation3 + $0x60] sm:$0xff]  ;;  %v93_v21 = vld [vmem:[#allocation3 + $0x68] sm:$0xff]  ;;  %v82_v26 = vld [vmem:[#allocation3 + $0x10] sm:$0xff] }
  0x13   :  { %116 = vmatpush.msra.mxu0 %v109_v3  ;;  %260 = vmatpush.msra.mxu1 %v109_v3  ;;  %v80_v18 = vld [vmem:[#allocation3] sm:$0xff]  ;;  %v81_v22 = vld [vmem:[#allocation3 + $0x8] sm:$0xff]  ;;  %v86_v27 = vld [vmem:[#allocation3 + $0x30] sm:$0xff] }
  0x14   :  { %264 = vmatpush.msra.mxu2 %v108_v4  ;;  %265 = vmatpush.msra.mxu3 %v108_v4  ;;  %v84_v19 = vld [vmem:[#allocation3 + $0x20] sm:$0xff]  ;;  %v85_v23 = vld [vmem:[#allocation3 + $0x28] sm:$0xff]  ;;  %v91_v28 = vld [vmem:[#allocation3 + $0x58] sm:$0xff] }
  0x15   :  { %117 = vmatpush.msra.mxu0 %v108_v4  ;;  %263 = vmatpush.msra.mxu1 %v108_v4  ;;  %v95_v29 = vld [vmem:[#allocation3 + $0x78] sm:$0xff] }
  0x16   :  { %267 = vmatpush.msra.mxu2 %v107_v5  ;;  %268 = vmatpush.msra.mxu3 %v107_v5  ;;  %v83_v30 = vld [vmem:[#allocation3 + $0x18] sm:$0xff] }
  0x17   :  { %118 = vmatpush.msra.mxu0 %v107_v5  ;;  %266 = vmatpush.msra.mxu1 %v107_v5  ;;  %v87_v31 = vld [vmem:[#allocation3 + $0x38] sm:$0xff] }
  0x18   :  { %270 = vmatpush.msra.mxu2 %v106_v6  ;;  %271 = vmatpush.msra.mxu3 %v106_v6 }
  0x19   :  { %119 = vmatpush.msra.mxu0 %v106_v6  ;;  %269 = vmatpush.msra.mxu1 %v106_v6 }
  0x1a   :  { %273 = vmatpush.msra.mxu2 %v105_v7  ;;  %274 = vmatpush.msra.mxu3 %v105_v7 }
  0x1b   :  { %120 = vmatpush.msra.mxu0 %v105_v7  ;;  %272 = vmatpush.msra.mxu1 %v105_v7 }
  0x1c   :  { %276 = vmatpush.msra.mxu2 %v104_v8  ;;  %277 = vmatpush.msra.mxu3 %v104_v8 }
  0x1d   :  { %121 = vmatpush.msra.mxu0 %v104_v8  ;;  %275 = vmatpush.msra.mxu1 %v104_v8 }
  0x1e   :  { %279 = vmatpush.msra.mxu2 %v103_v9  ;;  %280 = vmatpush.msra.mxu3 %v103_v9 }
  0x1f   :  { %122 = vmatpush.msra.mxu0 %v103_v9  ;;  %278 = vmatpush.msra.mxu1 %v103_v9 }
  0x20   :  { %282 = vmatpush.msra.mxu2 %v102_v10  ;;  %283 = vmatpush.msra.mxu3 %v102_v10 }
  0x21   :  { %123 = vmatpush.msra.mxu0 %v102_v10  ;;  %281 = vmatpush.msra.mxu1 %v102_v10 }
  0x22   :  { %285 = vmatpush.msra.mxu2 %v101_v11  ;;  %286 = vmatpush.msra.mxu3 %v101_v11 }
  0x23   :  { %124 = vmatpush.msra.mxu0 %v101_v11  ;;  %284 = vmatpush.msra.mxu1 %v101_v11 }
  0x24   :  { %288 = vmatpush.msra.mxu2 %v100_v12  ;;  %289 = vmatpush.msra.mxu3 %v100_v12 }
  0x25   :  { %125 = vmatpush.msra.mxu0 %v100_v12  ;;  %287 = vmatpush.msra.mxu1 %v100_v12 }
  0x26   :  { %291 = vmatpush.msra.mxu2 %v99_v13  ;;  %292 = vmatpush.msra.mxu3 %v99_v13 }
  0x27   :  { %126 = vmatpush.msra.mxu0 %v99_v13  ;;  %290 = vmatpush.msra.mxu1 %v99_v13 }
  0x28   :  { %294 = vmatpush.msra.mxu2 %v98_v14  ;;  %295 = vmatpush.msra.mxu3 %v98_v14 }
  0x29   :  { %127 = vmatpush.msra.mxu0 %v98_v14  ;;  %293 = vmatpush.msra.mxu1 %v98_v14 }
  0x2a   :  { %297 = vmatpush.msra.mxu2 %v97_v15  ;;  %298 = vmatpush.msra.mxu3 %v97_v15 }
  0x2b   :  { %153 = vmatmul.f32.vlgmr.msra.gmra.mxu2 %v88_v16  ;;  %165 = vmatmul.f32.vlgmr.msra.gmra.mxu3 %v92_v17 }
  0x2c   :  { %128 = vmatpush.msra.mxu0 %v97_v15  ;;  %296 = vmatpush.msra.mxu1 %v97_v15 }
  0x2d   :  { %129 = vmatmul.f32.vlgmr.msra.gmra.mxu0 %v80_v18  ;;  %141 = vmatmul.f32.vlgmr.msra.gmra.mxu1 %v84_v19 }
  0x33   :  { %156 = vmatmul.f32.gmra.mxu2 %v89_v20  ;;  %168 = vmatmul.f32.gmra.mxu3 %v93_v21 }
  0x35   :  { %132 = vmatmul.f32.gmra.mxu0 %v81_v22  ;;  %144 = vmatmul.f32.gmra.mxu1 %v85_v23 }
  0x3b   :  { %159 = vmatmul.f32.gmra.mxu2 %v90_v24  ;;  %171 = vmatmul.f32.gmra.mxu3 %v94_v25 }
  0x3d   :  { %135 = vmatmul.f32.gmra.mxu0 %v82_v26  ;;  %147 = vmatmul.f32.gmra.mxu1 %v86_v27 }
  0x43   :  { %162 = vmatmul.f32.gmra.mxu2 %v91_v28  ;;  %174 = vmatmul.f32.gmra.mxu3 %v95_v29 }
  0x45   :  { %138 = vmatmul.f32.gmra.mxu0 %v83_v30  ;;  %150 = vmatmul.f32.gmra.mxu1 %v87_v31 }
  0xaa   :  { %v130_v32 = vpop.f32.mrf.mxu0  ;;  %v142_v33 = vpop.f32.mrf.mxu1 }
  0xab   :  { %229 = vst [vmem:[%s430_s2] sm:$0xff] %v130_v32 }
  0xac   :  { %233 = vst [vmem:[%s430_s2 + $0x20] sm:$0xff] %v142_v33 }
  0xae   :  { %v154_v34 = vpop.f32.mrf.mxu2  ;;  %v166_v35 = vpop.f32.mrf.mxu3 }
  0xaf   :  { %237 = vst [vmem:[%s430_s2 + $0x40] sm:$0xff] %v154_v34 }
  0xb0   :  { %241 = vst [vmem:[%s430_s2 + $0x60] sm:$0xff] %v166_v35 }
  0xb2   :  { %v133_v36 = vpop.f32.mrf.mxu0  ;;  %v145_v37 = vpop.f32.mrf.mxu1 }
  0xb3   :  { %230 = vst [vmem:[%s430_s2 + $0x8] sm:$0xff] %v133_v36 }
  0xb4   :  { %234 = vst [vmem:[%s430_s2 + $0x28] sm:$0xff] %v145_v37 }
  0xb6   :  { %v157_v38 = vpop.f32.mrf.mxu2  ;;  %v169_v39 = vpop.f32.mrf.mxu3 }
  0xb7   :  { %238 = vst [vmem:[%s430_s2 + $0x48] sm:$0xff] %v157_v38 }
  0xb8   :  { %242 = vst [vmem:[%s430_s2 + $0x68] sm:$0xff] %v169_v39 }
  0xba   :  { %v136_v40 = vpop.f32.mrf.mxu0  ;;  %v148_v41 = vpop.f32.mrf.mxu1 }
  0xbb   :  { %231 = vst [vmem:[%s430_s2 + $0x10] sm:$0xff] %v136_v40 }
  0xbc   :  { %235 = vst [vmem:[%s430_s2 + $0x30] sm:$0xff] %v148_v41 }
  0xbe   :  { %v160_v42 = vpop.f32.mrf.mxu2  ;;  %v172_v43 = vpop.f32.mrf.mxu3 }
  0xbf   :  { %239 = vst [vmem:[%s430_s2 + $0x50] sm:$0xff] %v160_v42 }
  0xc0   :  { %243 = vst [vmem:[%s430_s2 + $0x70] sm:$0xff] %v172_v43 }
  0xc2   :  { %v139_v44 = vpop.f32.mrf.mxu0  ;;  %v151_v45 = vpop.f32.mrf.mxu1 }
  0xc3   :  { %232 = vst [vmem:[%s430_s2 + $0x18] sm:$0xff] %v139_v44 }
  0xc4   :  { %236 = vst [vmem:[%s430_s2 + $0x38] sm:$0xff] %v151_v45 }
  0xc6   :  { %v163_v46 = vpop.f32.mrf.mxu2  ;;  %v175_v47 = vpop.f32.mrf.mxu3 }
  0xc7   :  { %240 = vst [vmem:[%s430_s2 + $0x58] sm:$0xff] %v163_v46 }
  0xc8   :  { %244 = vst [vmem:[%s430_s2 + $0x78] sm:$0xff] %v175_v47 }
  0xc9   :  { %249 = vsyncpa [#allocation4], 1 }
  0xca   :  { %250 = vsyncpa [#allocation6], 1 }

// kernel: gcn_forward_padded.5
= control target key start
LH: loop header
LB: loop body
LE: loop exit
PB: predicated region body
PF: predicated region fallthrough
CT: control target
= control target key end

     0   :  { %7 = vsyncpa [#allocation4], 0  ;;  %s327_s12 = smov [#allocation3]   ;;  %s328_s14 = smov 128   ;;  %s444_s0 = inlined_call_operand.hbm [shape: f32[128,128], index: 0, kind: input, shape index: {}]   ;;  %s445_s1 = inlined_call_operand.vmem [shape: f32[128,128], index: 1, kind: input, shape index: {}]   ;;  %s446_s2 = inlined_call_operand.vmem [shape: f32[128,128], index: 2, kind: output, shape index: {}]  }
   0x1   :  { %s12_s11 = sshll.u32 %s444_s0, 4  ;;  %s14_s13 = sshll.u32 %s327_s12, 4  ;;  %s13_s11 = int_to_ptr.hbm [resolvable:$true] %s12_s11  ;;  %s15_s13 = int_to_ptr.vmem [resolvable:$true] %s14_s13 }
   0x2   :  { %s329_s15 = smov 8  }
   0x3   :  { %20 = dma.hbm_to_vmem [thread:$0]  %s13_s11, 2048, %s15_s13, [#allocation4], %s328_s14, %s328_s14, %s329_s15  }
   0x4   :  { %325 = dma.done.wait [#allocation4], 2048  }
   0x5   :  { %326 = vsyncadd [#allocation4], 4294965248  ;;  %v96_v0 = vld [vmem:[%s445_s1 + $0x78] sm:$0xff]  ;;  %v95_v1 = vld [vmem:[%s445_s1 + $0x70] sm:$0xff] }
   0x6   :  { %251 = vmatpush.msra.mxu2 %v96_v0  ;;  %252 = vmatpush.msra.mxu3 %v96_v0  ;;  %v94_v2 = vld [vmem:[%s445_s1 + $0x68] sm:$0xff]  ;;  %v93_v3 = vld [vmem:[%s445_s1 + $0x60] sm:$0xff]  ;;  %v92_v4 = vld [vmem:[%s445_s1 + $0x58] sm:$0xff] }
   0x7   :  { %97 = vmatpush.msra.mxu0 %v96_v0  ;;  %250 = vmatpush.msra.mxu1 %v96_v0  ;;  %v91_v5 = vld [vmem:[%s445_s1 + $0x50] sm:$0xff]  ;;  %v90_v6 = vld [vmem:[%s445_s1 + $0x48] sm:$0xff]  ;;  %v89_v7 = vld [vmem:[%s445_s1 + $0x40] sm:$0xff] }
   0x8   :  { %254 = vmatpush.msra.mxu2 %v95_v1  ;;  %255 = vmatpush.msra.mxu3 %v95_v1  ;;  %v88_v8 = vld [vmem:[%s445_s1 + $0x38] sm:$0xff]  ;;  %v87_v9 = vld [vmem:[%s445_s1 + $0x30] sm:$0xff]  ;;  %v86_v10 = vld [vmem:[%s445_s1 + $0x28] sm:$0xff] }
   0x9   :  { %98 = vmatpush.msra.mxu0 %v95_v1  ;;  %253 = vmatpush.msra.mxu1 %v95_v1  ;;  %v85_v11 = vld [vmem:[%s445_s1 + $0x20] sm:$0xff]  ;;  %v84_v12 = vld [vmem:[%s445_s1 + $0x18] sm:$0xff]  ;;  %v83_v13 = vld [vmem:[%s445_s1 + $0x10] sm:$0xff] }
   0xa   :  { %257 = vmatpush.msra.mxu2 %v94_v2  ;;  %258 = vmatpush.msra.mxu3 %v94_v2  ;;  %v82_v14 = vld [vmem:[%s445_s1 + $0x8] sm:$0xff]  ;;  %v81_v15 = vld [vmem:[%s445_s1] sm:$0xff]  ;;  %v74_v24 = vld [vmem:[#allocation3 + $0x50] sm:$0xff] }
   0xb   :  { %99 = vmatpush.msra.mxu0 %v94_v2  ;;  %256 = vmatpush.msra.mxu1 %v94_v2  ;;  %v72_v16 = vld [vmem:[#allocation3 + $0x40] sm:$0xff]  ;;  %v73_v20 = vld [vmem:[#allocation3 + $0x48] sm:$0xff]  ;;  %v78_v25 = vld [vmem:[#allocation3 + $0x70] sm:$0xff] }
   0xc   :  { %260 = vmatpush.msra.mxu2 %v93_v3  ;;  %261 = vmatpush.msra.mxu3 %v93_v3  ;;  %v76_v17 = vld [vmem:[#allocation3 + $0x60] sm:$0xff]  ;;  %v77_v21 = vld [vmem:[#allocation3 + $0x68] sm:$0xff]  ;;  %v66_v26 = vld [vmem:[#allocation3 + $0x10] sm:$0xff] }
   0xd   :  { %100 = vmatpush.msra.mxu0 %v93_v3  ;;  %259 = vmatpush.msra.mxu1 %v93_v3  ;;  %v64_v18 = vld [vmem:[#allocation3] sm:$0xff]  ;;  %v65_v22 = vld [vmem:[#allocation3 + $0x8] sm:$0xff]  ;;  %v70_v27 = vld [vmem:[#allocation3 + $0x30] sm:$0xff] }
   0xe   :  { %263 = vmatpush.msra.mxu2 %v92_v4  ;;  %264 = vmatpush.msra.mxu3 %v92_v4  ;;  %v68_v19 = vld [vmem:[#allocation3 + $0x20] sm:$0xff]  ;;  %v69_v23 = vld [vmem:[#allocation3 + $0x28] sm:$0xff]  ;;  %v75_v28 = vld [vmem:[#allocation3 + $0x58] sm:$0xff] }
   0xf   :  { %101 = vmatpush.msra.mxu0 %v92_v4  ;;  %262 = vmatpush.msra.mxu1 %v92_v4  ;;  %v79_v29 = vld [vmem:[#allocation3 + $0x78] sm:$0xff] }
  0x10   :  { %266 = vmatpush.msra.mxu2 %v91_v5  ;;  %267 = vmatpush.msra.mxu3 %v91_v5  ;;  %v67_v30 = vld [vmem:[#allocation3 + $0x18] sm:$0xff] }
  0x11   :  { %102 = vmatpush.msra.mxu0 %v91_v5  ;;  %265 = vmatpush.msra.mxu1 %v91_v5  ;;  %v71_v31 = vld [vmem:[#allocation3 + $0x38] sm:$0xff] }
  0x12   :  { %269 = vmatpush.msra.mxu2 %v90_v6  ;;  %270 = vmatpush.msra.mxu3 %v90_v6 }
  0x13   :  { %103 = vmatpush.msra.mxu0 %v90_v6  ;;  %268 = vmatpush.msra.mxu1 %v90_v6 }
  0x14   :  { %272 = vmatpush.msra.mxu2 %v89_v7  ;;  %273 = vmatpush.msra.mxu3 %v89_v7 }
  0x15   :  { %104 = vmatpush.msra.mxu0 %v89_v7  ;;  %271 = vmatpush.msra.mxu1 %v89_v7 }
  0x16   :  { %275 = vmatpush.msra.mxu2 %v88_v8  ;;  %276 = vmatpush.msra.mxu3 %v88_v8 }
  0x17   :  { %105 = vmatpush.msra.mxu0 %v88_v8  ;;  %274 = vmatpush.msra.mxu1 %v88_v8 }
  0x18   :  { %278 = vmatpush.msra.mxu2 %v87_v9  ;;  %279 = vmatpush.msra.mxu3 %v87_v9 }
  0x19   :  { %106 = vmatpush.msra.mxu0 %v87_v9  ;;  %277 = vmatpush.msra.mxu1 %v87_v9 }
  0x1a   :  { %281 = vmatpush.msra.mxu2 %v86_v10  ;;  %282 = vmatpush.msra.mxu3 %v86_v10 }
  0x1b   :  { %107 = vmatpush.msra.mxu0 %v86_v10  ;;  %280 = vmatpush.msra.mxu1 %v86_v10 }
  0x1c   :  { %284 = vmatpush.msra.mxu2 %v85_v11  ;;  %285 = vmatpush.msra.mxu3 %v85_v11 }
  0x1d   :  { %108 = vmatpush.msra.mxu0 %v85_v11  ;;  %283 = vmatpush.msra.mxu1 %v85_v11 }
  0x1e   :  { %287 = vmatpush.msra.mxu2 %v84_v12  ;;  %288 = vmatpush.msra.mxu3 %v84_v12 }
  0x1f   :  { %109 = vmatpush.msra.mxu0 %v84_v12  ;;  %286 = vmatpush.msra.mxu1 %v84_v12 }
  0x20   :  { %290 = vmatpush.msra.mxu2 %v83_v13  ;;  %291 = vmatpush.msra.mxu3 %v83_v13 }
  0x21   :  { %110 = vmatpush.msra.mxu0 %v83_v13  ;;  %289 = vmatpush.msra.mxu1 %v83_v13 }
  0x22   :  { %293 = vmatpush.msra.mxu2 %v82_v14  ;;  %294 = vmatpush.msra.mxu3 %v82_v14 }
  0x23   :  { %111 = vmatpush.msra.mxu0 %v82_v14  ;;  %292 = vmatpush.msra.mxu1 %v82_v14 }
  0x24   :  { %296 = vmatpush.msra.mxu2 %v81_v15  ;;  %297 = vmatpush.msra.mxu3 %v81_v15 }
  0x25   :  { %137 = vmatmul.f32.vlgmr.msra.gmra.mxu2 %v72_v16  ;;  %149 = vmatmul.f32.vlgmr.msra.gmra.mxu3 %v76_v17 }
  0x26   :  { %112 = vmatpush.msra.mxu0 %v81_v15  ;;  %295 = vmatpush.msra.mxu1 %v81_v15 }
  0x27   :  { %113 = vmatmul.f32.vlgmr.msra.gmra.mxu0 %v64_v18  ;;  %125 = vmatmul.f32.vlgmr.msra.gmra.mxu1 %v68_v19 }
  0x2d   :  { %140 = vmatmul.f32.gmra.mxu2 %v73_v20  ;;  %152 = vmatmul.f32.gmra.mxu3 %v77_v21 }
  0x2f   :  { %116 = vmatmul.f32.gmra.mxu0 %v65_v22  ;;  %128 = vmatmul.f32.gmra.mxu1 %v69_v23 }
  0x35   :  { %143 = vmatmul.f32.gmra.mxu2 %v74_v24  ;;  %155 = vmatmul.f32.gmra.mxu3 %v78_v25 }
  0x37   :  { %119 = vmatmul.f32.gmra.mxu0 %v66_v26  ;;  %131 = vmatmul.f32.gmra.mxu1 %v70_v27 }
  0x3d   :  { %146 = vmatmul.f32.gmra.mxu2 %v75_v28  ;;  %158 = vmatmul.f32.gmra.mxu3 %v79_v29 }
  0x3f   :  { %122 = vmatmul.f32.gmra.mxu0 %v67_v30  ;;  %134 = vmatmul.f32.gmra.mxu1 %v71_v31 }
  0xa4   :  { %v114_v32 = vpop.f32.mrf.mxu0  ;;  %v126_v33 = vpop.f32.mrf.mxu1 }
  0xa5   :  { %v213_v34 = vmax.f32 %v114_v32, 0.0  ;;  %v217_v35 = vmax.f32 %v126_v33, 0.0 }
  0xa7   :  { %229 = vst [vmem:[%s446_s2] sm:$0xff] %v213_v34 }
  0xa8   :  { %233 = vst [vmem:[%s446_s2 + $0x20] sm:$0xff] %v217_v35  ;;  %v138_v36 = vpop.f32.mrf.mxu2  ;;  %v150_v37 = vpop.f32.mrf.mxu3 }
  0xa9   :  { %v221_v38 = vmax.f32 %v138_v36, 0.0  ;;  %v225_v39 = vmax.f32 %v150_v37, 0.0 }
  0xab   :  { %237 = vst [vmem:[%s446_s2 + $0x40] sm:$0xff] %v221_v38 }
  0xac   :  { %241 = vst [vmem:[%s446_s2 + $0x60] sm:$0xff] %v225_v39  ;;  %v117_v40 = vpop.f32.mrf.mxu0  ;;  %v129_v41 = vpop.f32.mrf.mxu1 }
  0xad   :  { %v214_v42 = vmax.f32 %v117_v40, 0.0  ;;  %v218_v43 = vmax.f32 %v129_v41, 0.0 }
  0xaf   :  { %230 = vst [vmem:[%s446_s2 + $0x8] sm:$0xff] %v214_v42 }
  0xb0   :  { %234 = vst [vmem:[%s446_s2 + $0x28] sm:$0xff] %v218_v43  ;;  %v141_v44 = vpop.f32.mrf.mxu2  ;;  %v153_v45 = vpop.f32.mrf.mxu3 }
  0xb1   :  { %v222_v46 = vmax.f32 %v141_v44, 0.0  ;;  %v226_v47 = vmax.f32 %v153_v45, 0.0 }
  0xb3   :  { %238 = vst [vmem:[%s446_s2 + $0x48] sm:$0xff] %v222_v46 }
  0xb4   :  { %242 = vst [vmem:[%s446_s2 + $0x68] sm:$0xff] %v226_v47  ;;  %v120_v48 = vpop.f32.mrf.mxu0  ;;  %v132_v49 = vpop.f32.mrf.mxu1 }
  0xb5   :  { %v215_v50 = vmax.f32 %v120_v48, 0.0  ;;  %v219_v51 = vmax.f32 %v132_v49, 0.0 }
  0xb7   :  { %231 = vst [vmem:[%s446_s2 + $0x10] sm:$0xff] %v215_v50 }
  0xb8   :  { %235 = vst [vmem:[%s446_s2 + $0x30] sm:$0xff] %v219_v51  ;;  %v144_v52 = vpop.f32.mrf.mxu2  ;;  %v156_v53 = vpop.f32.mrf.mxu3 }
  0xb9   :  { %v223_v54 = vmax.f32 %v144_v52, 0.0  ;;  %v227_v55 = vmax.f32 %v156_v53, 0.0 }
  0xbb   :  { %239 = vst [vmem:[%s446_s2 + $0x50] sm:$0xff] %v223_v54 }
  0xbc   :  { %243 = vst [vmem:[%s446_s2 + $0x70] sm:$0xff] %v227_v55  ;;  %v123_v56 = vpop.f32.mrf.mxu0  ;;  %v135_v57 = vpop.f32.mrf.mxu1 }
  0xbd   :  { %v216_v58 = vmax.f32 %v123_v56, 0.0  ;;  %v220_v59 = vmax.f32 %v135_v57, 0.0 }
  0xbf   :  { %232 = vst [vmem:[%s446_s2 + $0x18] sm:$0xff] %v216_v58 }
  0xc0   :  { %236 = vst [vmem:[%s446_s2 + $0x38] sm:$0xff] %v220_v59  ;;  %v147_v60 = vpop.f32.mrf.mxu2  ;;  %v159_v61 = vpop.f32.mrf.mxu3 }
  0xc1   :  { %v224_v62 = vmax.f32 %v147_v60, 0.0  ;;  %v228_v63 = vmax.f32 %v159_v61, 0.0 }
  0xc3   :  { %240 = vst [vmem:[%s446_s2 + $0x58] sm:$0xff] %v224_v62 }
  0xc4   :  { %244 = vst [vmem:[%s446_s2 + $0x78] sm:$0xff] %v228_v63 }
  0xc5   :  { %249 = vsyncpa [#allocation4], 1 }

// kernel: gcn_forward_padded.6
= control target key start
LH: loop header
LB: loop body
LE: loop exit
PB: predicated region body
PF: predicated region fallthrough
CT: control target
= control target key end

     0   :  { %7 = vsyncpa [#allocation4], 0  ;;  %s311_s12 = smov [#allocation3]   ;;  %s312_s14 = smov 128   ;;  %s428_s0 = inlined_call_operand.vmem [shape: f32[128,128], index: 0, kind: input, shape index: {}]   ;;  %s429_s1 = inlined_call_operand.hbm [shape: f32[128,128], index: 1, kind: input, shape index: {}]   ;;  %s430_s2 = inlined_call_operand.vmem [shape: f32[128,128], index: 2, kind: output, shape index: {}]  }
   0x1   :  { %s14_s11 = sshll.u32 %s429_s1, 4  ;;  %s16_s13 = sshll.u32 %s311_s12, 4  ;;  %s15_s11 = int_to_ptr.hbm [resolvable:$true] %s14_s11  ;;  %s17_s13 = int_to_ptr.vmem [resolvable:$true] %s16_s13 }
   0x2   :  { %s313_s15 = smov 8  }
   0x3   :  { %22 = dma.hbm_to_vmem [thread:$0]  %s15_s11, 2048, %s17_s13, [#allocation4], %s312_s14, %s312_s14, %s313_s15  }
   0x4   :  { %309 = dma.done.wait [#allocation4], 2048  }
   0x5   :  { %310 = vsyncadd [#allocation4], 4294965248  ;;  %v96_v0 = vld [vmem:[#allocation3 + $0x78] sm:$0xff]  ;;  %v95_v1 = vld [vmem:[#allocation3 + $0x70] sm:$0xff] }
   0x6   :  { %235 = vmatpush.msra.mxu2 %v96_v0  ;;  %236 = vmatpush.msra.mxu3 %v96_v0  ;;  %v94_v2 = vld [vmem:[#allocation3 + $0x68] sm:$0xff]  ;;  %v93_v3 = vld [vmem:[#allocation3 + $0x60] sm:$0xff]  ;;  %v92_v4 = vld [vmem:[#allocation3 + $0x58] sm:$0xff] }
   0x7   :  { %97 = vmatpush.msra.mxu0 %v96_v0  ;;  %234 = vmatpush.msra.mxu1 %v96_v0  ;;  %v91_v5 = vld [vmem:[#allocation3 + $0x50] sm:$0xff]  ;;  %v90_v6 = vld [vmem:[#allocation3 + $0x48] sm:$0xff]  ;;  %v89_v7 = vld [vmem:[#allocation3 + $0x40] sm:$0xff] }
   0x8   :  { %238 = vmatpush.msra.mxu2 %v95_v1  ;;  %239 = vmatpush.msra.mxu3 %v95_v1  ;;  %v88_v8 = vld [vmem:[#allocation3 + $0x38] sm:$0xff]  ;;  %v87_v9 = vld [vmem:[#allocation3 + $0x30] sm:$0xff]  ;;  %v86_v10 = vld [vmem:[#allocation3 + $0x28] sm:$0xff] }
   0x9   :  { %98 = vmatpush.msra.mxu0 %v95_v1  ;;  %237 = vmatpush.msra.mxu1 %v95_v1  ;;  %v85_v11 = vld [vmem:[#allocation3 + $0x20] sm:$0xff]  ;;  %v84_v12 = vld [vmem:[#allocation3 + $0x18] sm:$0xff]  ;;  %v83_v13 = vld [vmem:[#allocation3 + $0x10] sm:$0xff] }
   0xa   :  { %241 = vmatpush.msra.mxu2 %v94_v2  ;;  %242 = vmatpush.msra.mxu3 %v94_v2  ;;  %v82_v14 = vld [vmem:[#allocation3 + $0x8] sm:$0xff]  ;;  %v81_v15 = vld [vmem:[#allocation3] sm:$0xff]  ;;  %v74_v24 = vld [vmem:[%s428_s0 + $0x50] sm:$0xff] }
   0xb   :  { %99 = vmatpush.msra.mxu0 %v94_v2  ;;  %240 = vmatpush.msra.mxu1 %v94_v2  ;;  %v72_v16 = vld [vmem:[%s428_s0 + $0x40] sm:$0xff]  ;;  %v73_v20 = vld [vmem:[%s428_s0 + $0x48] sm:$0xff]  ;;  %v78_v25 = vld [vmem:[%s428_s0 + $0x70] sm:$0xff] }
   0xc   :  { %244 = vmatpush.msra.mxu2 %v93_v3  ;;  %245 = vmatpush.msra.mxu3 %v93_v3  ;;  %v76_v17 = vld [vmem:[%s428_s0 + $0x60] sm:$0xff]  ;;  %v77_v21 = vld [vmem:[%s428_s0 + $0x68] sm:$0xff]  ;;  %v66_v26 = vld [vmem:[%s428_s0 + $0x10] sm:$0xff] }
   0xd   :  { %100 = vmatpush.msra.mxu0 %v93_v3  ;;  %243 = vmatpush.msra.mxu1 %v93_v3  ;;  %v64_v18 = vld [vmem:[%s428_s0] sm:$0xff]  ;;  %v65_v22 = vld [vmem:[%s428_s0 + $0x8] sm:$0xff]  ;;  %v70_v27 = vld [vmem:[%s428_s0 + $0x30] sm:$0xff] }
   0xe   :  { %247 = vmatpush.msra.mxu2 %v92_v4  ;;  %248 = vmatpush.msra.mxu3 %v92_v4  ;;  %v68_v19 = vld [vmem:[%s428_s0 + $0x20] sm:$0xff]  ;;  %v69_v23 = vld [vmem:[%s428_s0 + $0x28] sm:$0xff]  ;;  %v75_v28 = vld [vmem:[%s428_s0 + $0x58] sm:$0xff] }
   0xf   :  { %101 = vmatpush.msra.mxu0 %v92_v4  ;;  %246 = vmatpush.msra.mxu1 %v92_v4  ;;  %v79_v29 = vld [vmem:[%s428_s0 + $0x78] sm:$0xff] }
  0x10   :  { %250 = vmatpush.msra.mxu2 %v91_v5  ;;  %251 = vmatpush.msra.mxu3 %v91_v5  ;;  %v67_v30 = vld [vmem:[%s428_s0 + $0x18] sm:$0xff] }
  0x11   :  { %102 = vmatpush.msra.mxu0 %v91_v5  ;;  %249 = vmatpush.msra.mxu1 %v91_v5  ;;  %v71_v31 = vld [vmem:[%s428_s0 + $0x38] sm:$0xff] }
  0x12   :  { %253 = vmatpush.msra.mxu2 %v90_v6  ;;  %254 = vmatpush.msra.mxu3 %v90_v6 }
  0x13   :  { %103 = vmatpush.msra.mxu0 %v90_v6  ;;  %252 = vmatpush.msra.mxu1 %v90_v6 }
  0x14   :  { %256 = vmatpush.msra.mxu2 %v89_v7  ;;  %257 = vmatpush.msra.mxu3 %v89_v7 }
  0x15   :  { %104 = vmatpush.msra.mxu0 %v89_v7  ;;  %255 = vmatpush.msra.mxu1 %v89_v7 }
  0x16   :  { %259 = vmatpush.msra.mxu2 %v88_v8  ;;  %260 = vmatpush.msra.mxu3 %v88_v8 }
  0x17   :  { %105 = vmatpush.msra.mxu0 %v88_v8  ;;  %258 = vmatpush.msra.mxu1 %v88_v8 }
  0x18   :  { %262 = vmatpush.msra.mxu2 %v87_v9  ;;  %263 = vmatpush.msra.mxu3 %v87_v9 }
  0x19   :  { %106 = vmatpush.msra.mxu0 %v87_v9  ;;  %261 = vmatpush.msra.mxu1 %v87_v9 }
  0x1a   :  { %265 = vmatpush.msra.mxu2 %v86_v10  ;;  %266 = vmatpush.msra.mxu3 %v86_v10 }
  0x1b   :  { %107 = vmatpush.msra.mxu0 %v86_v10  ;;  %264 = vmatpush.msra.mxu1 %v86_v10 }
  0x1c   :  { %268 = vmatpush.msra.mxu2 %v85_v11  ;;  %269 = vmatpush.msra.mxu3 %v85_v11 }
  0x1d   :  { %108 = vmatpush.msra.mxu0 %v85_v11  ;;  %267 = vmatpush.msra.mxu1 %v85_v11 }
  0x1e   :  { %271 = vmatpush.msra.mxu2 %v84_v12  ;;  %272 = vmatpush.msra.mxu3 %v84_v12 }
  0x1f   :  { %109 = vmatpush.msra.mxu0 %v84_v12  ;;  %270 = vmatpush.msra.mxu1 %v84_v12 }
  0x20   :  { %274 = vmatpush.msra.mxu2 %v83_v13  ;;  %275 = vmatpush.msra.mxu3 %v83_v13 }
  0x21   :  { %110 = vmatpush.msra.mxu0 %v83_v13  ;;  %273 = vmatpush.msra.mxu1 %v83_v13 }
  0x22   :  { %277 = vmatpush.msra.mxu2 %v82_v14  ;;  %278 = vmatpush.msra.mxu3 %v82_v14 }
  0x23   :  { %111 = vmatpush.msra.mxu0 %v82_v14  ;;  %276 = vmatpush.msra.mxu1 %v82_v14 }
  0x24   :  { %280 = vmatpush.msra.mxu2 %v81_v15  ;;  %281 = vmatpush.msra.mxu3 %v81_v15 }
  0x25   :  { %137 = vmatmul.f32.vlgmr.msra.gmra.mxu2 %v72_v16  ;;  %149 = vmatmul.f32.vlgmr.msra.gmra.mxu3 %v76_v17 }
  0x26   :  { %112 = vmatpush.msra.mxu0 %v81_v15  ;;  %279 = vmatpush.msra.mxu1 %v81_v15 }
  0x27   :  { %113 = vmatmul.f32.vlgmr.msra.gmra.mxu0 %v64_v18  ;;  %125 = vmatmul.f32.vlgmr.msra.gmra.mxu1 %v68_v19 }
  0x2d   :  { %140 = vmatmul.f32.gmra.mxu2 %v73_v20  ;;  %152 = vmatmul.f32.gmra.mxu3 %v77_v21 }
  0x2f   :  { %116 = vmatmul.f32.gmra.mxu0 %v65_v22  ;;  %128 = vmatmul.f32.gmra.mxu1 %v69_v23 }
  0x35   :  { %143 = vmatmul.f32.gmra.mxu2 %v74_v24  ;;  %155 = vmatmul.f32.gmra.mxu3 %v78_v25 }
  0x37   :  { %119 = vmatmul.f32.gmra.mxu0 %v66_v26  ;;  %131 = vmatmul.f32.gmra.mxu1 %v70_v27 }
  0x3d   :  { %146 = vmatmul.f32.gmra.mxu2 %v75_v28  ;;  %158 = vmatmul.f32.gmra.mxu3 %v79_v29 }
  0x3f   :  { %122 = vmatmul.f32.gmra.mxu0 %v67_v30  ;;  %134 = vmatmul.f32.gmra.mxu1 %v71_v31 }
  0xa4   :  { %v114_v32 = vpop.f32.mrf.mxu0  ;;  %v126_v33 = vpop.f32.mrf.mxu1 }
  0xa5   :  { %213 = vst [vmem:[%s430_s2] sm:$0xff] %v114_v32 }
  0xa6   :  { %217 = vst [vmem:[%s430_s2 + $0x20] sm:$0xff] %v126_v33 }
  0xa8   :  { %v138_v34 = vpop.f32.mrf.mxu2  ;;  %v150_v35 = vpop.f32.mrf.mxu3 }
  0xa9   :  { %221 = vst [vmem:[%s430_s2 + $0x40] sm:$0xff] %v138_v34 }
  0xaa   :  { %225 = vst [vmem:[%s430_s2 + $0x60] sm:$0xff] %v150_v35 }
  0xac   :  { %v117_v36 = vpop.f32.mrf.mxu0  ;;  %v129_v37 = vpop.f32.mrf.mxu1 }
  0xad   :  { %214 = vst [vmem:[%s430_s2 + $0x8] sm:$0xff] %v117_v36 }
  0xae   :  { %218 = vst [vmem:[%s430_s2 + $0x28] sm:$0xff] %v129_v37 }
  0xb0   :  { %v141_v38 = vpop.f32.mrf.mxu2  ;;  %v153_v39 = vpop.f32.mrf.mxu3 }
  0xb1   :  { %222 = vst [vmem:[%s430_s2 + $0x48] sm:$0xff] %v141_v38 }
  0xb2   :  { %226 = vst [vmem:[%s430_s2 + $0x68] sm:$0xff] %v153_v39 }
  0xb4   :  { %v120_v40 = vpop.f32.mrf.mxu0  ;;  %v132_v41 = vpop.f32.mrf.mxu1 }
  0xb5   :  { %215 = vst [vmem:[%s430_s2 + $0x10] sm:$0xff] %v120_v40 }
  0xb6   :  { %219 = vst [vmem:[%s430_s2 + $0x30] sm:$0xff] %v132_v41 }
  0xb8   :  { %v144_v42 = vpop.f32.mrf.mxu2  ;;  %v156_v43 = vpop.f32.mrf.mxu3 }
  0xb9   :  { %223 = vst [vmem:[%s430_s2 + $0x50] sm:$0xff] %v144_v42 }
  0xba   :  { %227 = vst [vmem:[%s430_s2 + $0x70] sm:$0xff] %v156_v43 }
  0xbc   :  { %v123_v44 = vpop.f32.mrf.mxu0  ;;  %v135_v45 = vpop.f32.mrf.mxu1 }
  0xbd   :  { %216 = vst [vmem:[%s430_s2 + $0x18] sm:$0xff] %v123_v44 }
  0xbe   :  { %220 = vst [vmem:[%s430_s2 + $0x38] sm:$0xff] %v135_v45 }
  0xc0   :  { %v147_v46 = vpop.f32.mrf.mxu2  ;;  %v159_v47 = vpop.f32.mrf.mxu3 }
  0xc1   :  { %224 = vst [vmem:[%s430_s2 + $0x58] sm:$0xff] %v147_v46 }
  0xc2   :  { %228 = vst [vmem:[%s430_s2 + $0x78] sm:$0xff] %v159_v47 }
  0xc3   :  { %233 = vsyncpa [#allocation4], 1 }

</bundles_post_ra>
